<compile_context>
chip_gen: v5e
topology: v5e:2x2
jax: 0.10.0
libtpu: 0.0.40
codegen_flags: <defaults>
</compile_context>

<pallas_src>
import jax
import jax.numpy as jnp
from jax.experimental import pallas as pl
from jax.experimental.pallas import tpu as pltpu

_NEG = -1e30  # bias value for padded logit lanes -> exp() underflows to exactly 0


def _round_up(x, m):
    return ((x + m - 1) // m) * m


def _make_siamese_kernel(n_layers, relu_flags, mxu_dtype):
    """Fused kernel body. refs = (x, bias_pack, w_first, w_pack, out)."""

    def kernel(x_ref, b_ref, w0_ref, wp_ref, o_ref):
        b_all = b_ref[...]            # (n_layers, WIDTH) f32
        h = x_ref[...]                # (bb, 2D)

        # Fused MLP: block-diag shared encoder layers followed by the head layers.
        # Every hidden width is zero-padded to WIDTH lanes; padded lanes stay exactly 0
        # through bias/ReLU and meet zero weight rows in the next layer.
        for li in range(n_layers):
            w = w0_ref[...] if li == 0 else wp_ref[li - 1]        # bf16 (in, WIDTH)
            h = jnp.dot(h.astype(mxu_dtype), w, preferred_element_type=jnp.float32)
            h = h + b_all[li : li + 1, :]
            if relu_flags[li]:
                h = jnp.maximum(h, 0.0)

        # Softmax over the lane-padded (WIDTH-wide) logits. Padded lanes carry bias
        # -1e30 so exp -> 0: real columns get the exact softmax, padded columns are 0,
        # and the store is lane-dense. Exact division so rows sum to 1 to f32 precision.
        m = jnp.max(h, axis=-1, keepdims=True)
        e = jnp.exp(h - m)
        denom = jnp.sum(e, axis=-1, keepdims=True)
        o_ref[...] = (e / denom).astype(o_ref.dtype)

    return kernel


def siamese_forward(x, enc_params, net_params, *, block_b=None, min_grid_steps=1,
                    mxu_dtype=jnp.bfloat16, out_dtype=jnp.bfloat16):
    """x: (B, 2*D) f32 or bf16. enc_params / net_params: lists of (W:(in,out), b:(1,out)).

    min_grid_steps: set to 2 on v7x (2 TensorCores/chip) so both cores get a batch tile;
    leave at 1 on single-TC v5e/v6e.
    """
    B, twoD = x.shape
    n_enc, n_net = len(enc_params), len(net_params)
    n_layers = n_enc + n_net
    n_classes = net_params[-1][0].shape[1]

    # ---- fused layer list: block-diagonal shared encoder, then the head ----
    layers_w, layers_b = [], []
    for (w, b) in enc_params:
        i, o = w.shape
        wbd = jnp.zeros((2 * i, 2 * o), jnp.float32).at[:i, :o].set(w).at[i:, o:].set(w)
        layers_w.append(wbd)
        layers_b.append(jnp.concatenate([b.reshape(-1), b.reshape(-1)]))
    for (w, b) in net_params:
        layers_w.append(w.astype(jnp.float32))
        layers_b.append(b.reshape(-1))

    # ReLU after every layer except the last encoder layer and the final head layer.
    relu_flags = tuple(l != n_enc - 1 and l != n_layers - 1 for l in range(n_layers))

    # ---- uniform lane padding: every hidden/out width -> WIDTH (multiple of 128) ----
    max_dim = max([w.shape[1] for w in layers_w] + [w.shape[0] for w in layers_w[1:]])
    WIDTH = _round_up(max(max_dim, 128), 128)

    # First layer keeps its natural (2*D) rows (x is not lane-padded); cols padded.
    w_first = (
        jnp.zeros((twoD, WIDTH), jnp.float32)
        .at[:, : layers_w[0].shape[1]]
        .set(layers_w[0])
        .astype(mxu_dtype)
    )
    # Remaining layers packed into one (n_layers-1, WIDTH, WIDTH) bf16 array.
    w_pack = jnp.zeros((max(n_layers - 1, 1), WIDTH, WIDTH), jnp.float32)
    for l in range(1, n_layers):
        w = layers_w[l]
        w_pack = w_pack.at[l - 1, : w.shape[0], : w.shape[1]].set(w)
    w_pack = w_pack.astype(mxu_dtype)

    # All biases in one f32 pack; padded logit lanes of the last layer get -1e30.
    b_pack = jnp.zeros((n_layers, WIDTH), jnp.float32)
    b_pack = b_pack.at[n_layers - 1, :].set(_NEG)
    for l in range(n_layers):
        b = layers_b[l]
        b_pack = b_pack.at[l, : b.shape[0]].set(b)

    # ---- batch tiling: <=256-row tiles, multiple of 16 (bf16 output sublane pack) ----
    if block_b is None:
        block_b = -(-B // max(min_grid_steps, 1))       # ceil(B / steps)
    block_b = max(16, min(_round_up(block_b, 16), 256))
    B_pad = _round_up(B, block_b)
    if B_pad != B:
        x = jnp.pad(x, ((0, B_pad - B), (0, 0)))
    grid = (B_pad // block_b,)

    kernel = _make_siamese_kernel(n_layers, relu_flags, mxu_dtype)

    # x is tiled over the batch grid axis; the bias pack and weight packs are broadcast
    # (constant index_map) and stay VMEM-resident across grid steps.
    out = pl.pallas_call(
        kernel,
        grid=grid,
        in_specs=[
            pl.BlockSpec((block_b, twoD), lambda i: (i, 0)),
            pl.BlockSpec(b_pack.shape, lambda i: (0, 0)),
            pl.BlockSpec(w_first.shape, lambda i: (0, 0)),
            pl.BlockSpec(w_pack.shape, lambda i: (0, 0, 0)),
        ],
        out_specs=pl.BlockSpec((block_b, WIDTH), lambda i: (i, 0)),
        out_shape=jax.ShapeDtypeStruct((B_pad, WIDTH), out_dtype),
        compiler_params=pltpu.CompilerParams(dimension_semantics=("parallel",)),
    )(x, b_pack, w_first, w_pack)

    return out[:B, :n_classes].astype(jnp.float32)


# ------------------------- pure-JAX reference (for checking) -------------------------


def siamese_reference(x, enc_params, net_params, mxu_dtype=None):
    D = x.shape[1] // 2

    def dot(a, w):
        if mxu_dtype is not None:
            return jnp.dot(a.astype(mxu_dtype), w.astype(mxu_dtype),
                           preferred_element_type=jnp.float32)
        return a @ w

    def mlp(z, params):
        h = z
        for li, (w, b) in enumerate(params):
            h = dot(h, w) + b
            if li < len(params) - 1:
                h = jnp.maximum(h, 0.0)
        return h

    h = jnp.concatenate([mlp(x[:, :D], enc_params), mlp(x[:, D:], enc_params)], axis=-1)
    return jax.nn.softmax(mlp(h, net_params), axis=-1)


# ------------------------------------ main ------------------------------------------


def _init_linear(key, fan_in, fan_out):
    kw, kb = jax.random.split(key)
    bound = 1.0 / jnp.sqrt(fan_in)
    w = jax.random.uniform(kw, (fan_in, fan_out), jnp.float32, -bound, bound)
    b = jax.random.uniform(kb, (1, fan_out), jnp.float32, -bound, bound)
    return w, b


if __name__ == "__main__":
    key = jax.random.PRNGKey(0)

    # Small shapes consistent with the module structure:
    #   encoder (AE().encoder): MLP shapes [D, 32, 8]  -> latent = 8
    #   net (Network):          shapes [2*latent] + hidden_size + [2]
    B = 8
    D = 16
    enc_shapes = [D, 32, 8]
    hidden_size = [32, 16, 8]  # scaled-down analog of (400, 200, 100)
    net_shapes = [enc_shapes[-1] * 2] + hidden_size + [2]

    keys = jax.random.split(key, 1 + (len(enc_shapes) - 1) + (len(net_shapes) - 1))
    kx, layer_keys = keys[0], keys[1:]

    enc_params, net_params = [], []
    ki = 0
    for i in range(len(enc_shapes) - 1):
        enc_params.append(_init_linear(layer_keys[ki], enc_shapes[i], enc_shapes[i + 1]))
        ki += 1
    for i in range(len(net_shapes) - 1):
        net_params.append(_init_linear(layer_keys[ki], net_shapes[i], net_shapes[i + 1]))
        ki += 1

    x = jax.random.normal(kx, (B, 2 * D), jnp.float32)

    out = jax.block_until_ready(siamese_forward(x, enc_params, net_params))
    assert out.shape == (B, 2)

    # Checks: vs a reference matching the kernel's precision (bf16 MXU operands, f32
    # accumulation; kernel additionally rounds the output to bf16), vs the pure-f32
    # reference, and softmax rows sum to 1 (up to bf16 output rounding).
    ref_bf16 = siamese_reference(x, enc_params, net_params, mxu_dtype=jnp.bfloat16)
    ref_f32 = siamese_reference(x, enc_params, net_params)
    assert jnp.allclose(out, ref_bf16, atol=8e-3), "mismatch vs bf16-matched reference"
    assert jnp.allclose(out, ref_f32, atol=5e-2), "mismatch vs f32 reference"
    assert jnp.allclose(jnp.sum(out, axis=-1), 1.0, atol=1e-2), "softmax rows must sum to 1"

    print("KERNEL_OK")
</pallas_src>

<mosaic_0001>
module attributes {stable_mosaic.version = 11 : i64} {
  func.func @kernel(%arg0: i32, %arg1: memref<16x32xf32, #tpu.memory_space<vmem>>, %arg2: memref<6x128xf32, #tpu.memory_space<vmem>>, %arg3: memref<32x128xbf16, #tpu.memory_space<vmem>>, %arg4: memref<5x128x128xbf16, #tpu.memory_space<vmem>>, %arg5: memref<16x128xbf16, #tpu.memory_space<vmem>>) attributes {dimension_semantics = [#tpu.dimension_semantics<parallel>], iteration_bounds = array<i64: 1>, scalar_prefetch = 0 : i64, scratch_operands = 0 : i64, tpu.core_type = #tpu.core_type<tc>, window_params = [{transform_indices = @transform_0, window_bounds = array<i64: 16, 32>}, {pipeline_mode = #tpu.pipeline_mode<synchronous>, transform_indices = @transform_1, window_bounds = array<i64: 6, 128>}, {pipeline_mode = #tpu.pipeline_mode<synchronous>, transform_indices = @transform_2, window_bounds = array<i64: 32, 128>}, {pipeline_mode = #tpu.pipeline_mode<synchronous>, transform_indices = @transform_3, window_bounds = array<i64: 5, 128, 128>}, {transform_indices = @transform_4, window_bounds = array<i64: 16, 128>}]} {
    %c0 = arith.constant 0 : index
    %c0_0 = arith.constant 0 : index
    %0 = vector.load %arg2[%c0, %c0_0] : memref<6x128xf32, #tpu.memory_space<vmem>>, vector<6x128xf32>
    %c0_1 = arith.constant 0 : index
    %c0_2 = arith.constant 0 : index
    %1 = vector.load %arg1[%c0_1, %c0_2] : memref<16x32xf32, #tpu.memory_space<vmem>>, vector<16x32xf32>
    %c0_3 = arith.constant 0 : index
    %c0_4 = arith.constant 0 : index
    %2 = vector.load %arg3[%c0_3, %c0_4] : memref<32x128xbf16, #tpu.memory_space<vmem>>, vector<32x128xbf16>
    %3 = arith.truncf %1 : vector<16x32xf32> to vector<16x32xbf16>
    %cst = arith.constant dense<0.000000e+00> : vector<16x128xf32>
    %4 = tpu.matmul %3, %2, %cst {dimension_numbers = #tpu.dot_dimension_numbers<[1], [0], [0], [1], [0, 0, 1, 1], [], []>} : vector<16x32xbf16>, vector<32x128xbf16>, vector<16x128xf32> -> vector<16x128xf32>
    %5 = vector.extract_strided_slice %0 {offsets = [0, 0], sizes = [1, 128], strides = [1, 1]} : vector<6x128xf32> to vector<1x128xf32>
    %6 = vector.broadcast %5 : vector<1x128xf32> to vector<16x128xf32>
    %7 = arith.addf %4, %6 : vector<16x128xf32>
    %cst_5 = arith.constant 0.000000e+00 : f32
    %8 = vector.broadcast %cst_5 : f32 to vector<16x128xf32>
    %9 = arith.maximumf %7, %8 : vector<16x128xf32>
    %c0_6 = arith.constant 0 : index
    %c0_7 = arith.constant 0 : index
    %c0_8 = arith.constant 0 : index
    %10 = vector.load %arg4[%c0_6, %c0_7, %c0_8] : memref<5x128x128xbf16, #tpu.memory_space<vmem>>, vector<1x128x128xbf16>
    %11 = vector.shape_cast %10 : vector<1x128x128xbf16> to vector<128x128xbf16>
    %12 = arith.truncf %9 : vector<16x128xf32> to vector<16x128xbf16>
    %cst_9 = arith.constant dense<0.000000e+00> : vector<16x128xf32>
    %13 = tpu.matmul %12, %11, %cst_9 {dimension_numbers = #tpu.dot_dimension_numbers<[1], [0], [0], [1], [0, 0, 1, 1], [], []>} : vector<16x128xbf16>, vector<128x128xbf16>, vector<16x128xf32> -> vector<16x128xf32>
    %14 = vector.extract_strided_slice %0 {offsets = [1, 0], sizes = [1, 128], strides = [1, 1]} : vector<6x128xf32> to vector<1x128xf32>
    %15 = vector.broadcast %14 : vector<1x128xf32> to vector<16x128xf32>
    %16 = arith.addf %13, %15 : vector<16x128xf32>
    %c1 = arith.constant 1 : index
    %c0_10 = arith.constant 0 : index
    %c0_11 = arith.constant 0 : index
    %17 = vector.load %arg4[%c1, %c0_10, %c0_11] : memref<5x128x128xbf16, #tpu.memory_space<vmem>>, vector<1x128x128xbf16>
    %18 = vector.shape_cast %17 : vector<1x128x128xbf16> to vector<128x128xbf16>
    %19 = arith.truncf %16 : vector<16x128xf32> to vector<16x128xbf16>
    %cst_12 = arith.constant dense<0.000000e+00> : vector<16x128xf32>
    %20 = tpu.matmul %19, %18, %cst_12 {dimension_numbers = #tpu.dot_dimension_numbers<[1], [0], [0], [1], [0, 0, 1, 1], [], []>} : vector<16x128xbf16>, vector<128x128xbf16>, vector<16x128xf32> -> vector<16x128xf32>
    %21 = vector.extract_strided_slice %0 {offsets = [2, 0], sizes = [1, 128], strides = [1, 1]} : vector<6x128xf32> to vector<1x128xf32>
    %22 = vector.broadcast %21 : vector<1x128xf32> to vector<16x128xf32>
    %23 = arith.addf %20, %22 : vector<16x128xf32>
    %cst_13 = arith.constant 0.000000e+00 : f32
    %24 = vector.broadcast %cst_13 : f32 to vector<16x128xf32>
    %25 = arith.maximumf %23, %24 : vector<16x128xf32>
    %c2 = arith.constant 2 : index
    %c0_14 = arith.constant 0 : index
    %c0_15 = arith.constant 0 : index
    %26 = vector.load %arg4[%c2, %c0_14, %c0_15] : memref<5x128x128xbf16, #tpu.memory_space<vmem>>, vector<1x128x128xbf16>
    %27 = vector.shape_cast %26 : vector<1x128x128xbf16> to vector<128x128xbf16>
    %28 = arith.truncf %25 : vector<16x128xf32> to vector<16x128xbf16>
    %cst_16 = arith.constant dense<0.000000e+00> : vector<16x128xf32>
    %29 = tpu.matmul %28, %27, %cst_16 {dimension_numbers = #tpu.dot_dimension_numbers<[1], [0], [0], [1], [0, 0, 1, 1], [], []>} : vector<16x128xbf16>, vector<128x128xbf16>, vector<16x128xf32> -> vector<16x128xf32>
    %30 = vector.extract_strided_slice %0 {offsets = [3, 0], sizes = [1, 128], strides = [1, 1]} : vector<6x128xf32> to vector<1x128xf32>
    %31 = vector.broadcast %30 : vector<1x128xf32> to vector<16x128xf32>
    %32 = arith.addf %29, %31 : vector<16x128xf32>
    %cst_17 = arith.constant 0.000000e+00 : f32
    %33 = vector.broadcast %cst_17 : f32 to vector<16x128xf32>
    %34 = arith.maximumf %32, %33 : vector<16x128xf32>
    %c3 = arith.constant 3 : index
    %c0_18 = arith.constant 0 : index
    %c0_19 = arith.constant 0 : index
    %35 = vector.load %arg4[%c3, %c0_18, %c0_19] : memref<5x128x128xbf16, #tpu.memory_space<vmem>>, vector<1x128x128xbf16>
    %36 = vector.shape_cast %35 : vector<1x128x128xbf16> to vector<128x128xbf16>
    %37 = arith.truncf %34 : vector<16x128xf32> to vector<16x128xbf16>
    %cst_20 = arith.constant dense<0.000000e+00> : vector<16x128xf32>
    %38 = tpu.matmul %37, %36, %cst_20 {dimension_numbers = #tpu.dot_dimension_numbers<[1], [0], [0], [1], [0, 0, 1, 1], [], []>} : vector<16x128xbf16>, vector<128x128xbf16>, vector<16x128xf32> -> vector<16x128xf32>
    %39 = vector.extract_strided_slice %0 {offsets = [4, 0], sizes = [1, 128], strides = [1, 1]} : vector<6x128xf32> to vector<1x128xf32>
    %40 = vector.broadcast %39 : vector<1x128xf32> to vector<16x128xf32>
    %41 = arith.addf %38, %40 : vector<16x128xf32>
    %cst_21 = arith.constant 0.000000e+00 : f32
    %42 = vector.broadcast %cst_21 : f32 to vector<16x128xf32>
    %43 = arith.maximumf %41, %42 : vector<16x128xf32>
    %c4 = arith.constant 4 : index
    %c0_22 = arith.constant 0 : index
    %c0_23 = arith.constant 0 : index
    %44 = vector.load %arg4[%c4, %c0_22, %c0_23] : memref<5x128x128xbf16, #tpu.memory_space<vmem>>, vector<1x128x128xbf16>
    %45 = vector.shape_cast %44 : vector<1x128x128xbf16> to vector<128x128xbf16>
    %46 = arith.truncf %43 : vector<16x128xf32> to vector<16x128xbf16>
    %cst_24 = arith.constant dense<0.000000e+00> : vector<16x128xf32>
    %47 = tpu.matmul %46, %45, %cst_24 {dimension_numbers = #tpu.dot_dimension_numbers<[1], [0], [0], [1], [0, 0, 1, 1], [], []>} : vector<16x128xbf16>, vector<128x128xbf16>, vector<16x128xf32> -> vector<16x128xf32>
    %48 = vector.extract_strided_slice %0 {offsets = [5, 0], sizes = [1, 128], strides = [1, 1]} : vector<6x128xf32> to vector<1x128xf32>
    %49 = vector.broadcast %48 : vector<1x128xf32> to vector<16x128xf32>
    %50 = arith.addf %47, %49 : vector<16x128xf32>
    %cst_25 = arith.constant dense<0xFF800000> : vector<16xf32>
    %51 = vector.multi_reduction <maximumf>, %50, %cst_25 [1] : vector<16x128xf32> to vector<16xf32>
    %52 = vector.shape_cast %51 : vector<16xf32> to vector<16x1xf32>
    %53 = vector.broadcast %52 : vector<16x1xf32> to vector<16x128xf32>
    %54 = arith.subf %50, %53 : vector<16x128xf32>
    %55 = math.exp %54 : vector<16x128xf32>
    %cst_26 = arith.constant dense<0.000000e+00> : vector<16xf32>
    %56 = vector.multi_reduction <add>, %55, %cst_26 [1] : vector<16x128xf32> to vector<16xf32>
    %57 = vector.shape_cast %56 : vector<16xf32> to vector<16x1xf32>
    %58 = vector.broadcast %57 : vector<16x1xf32> to vector<16x128xf32>
    %59 = arith.divf %55, %58 : vector<16x128xf32>
    %60 = arith.truncf %59 : vector<16x128xf32> to vector<16x128xbf16>
    %c0_27 = arith.constant 0 : index
    %c0_28 = arith.constant 0 : index
    %61 = vector.load %arg5[%c0_27, %c0_28] : memref<16x128xbf16, #tpu.memory_space<vmem>>, vector<16x128xbf16>
    tpu.vector_store %arg5[%c0_27, %c0_28], %60 {strides = array<i32>} : memref<16x128xbf16, #tpu.memory_space<vmem>>, vector<16x128xbf16>,
    return
  }
  func.func @transform_0(%arg0: i32) -> (i32, i32) {
    %c0_i32 = arith.constant 0 : i32
    %c0_i32_0 = arith.constant 0 : i32
    return %arg0, %c0_i32 : i32, i32
  }
  func.func @transform_1(%arg0: i32) -> (i32, i32) {
    %c0_i32 = arith.constant 0 : i32
    %c0_i32_0 = arith.constant 0 : i32
    %c0_i32_1 = arith.constant 0 : i32
    return %c0_i32, %c0_i32_0 : i32, i32
  }
  func.func @transform_2(%arg0: i32) -> (i32, i32) {
    %c0_i32 = arith.constant 0 : i32
    %c0_i32_0 = arith.constant 0 : i32
    %c0_i32_1 = arith.constant 0 : i32
    return %c0_i32, %c0_i32_0 : i32, i32
  }
  func.func @transform_3(%arg0: i32) -> (i32, i32, i32) {
    %c0_i32 = arith.constant 0 : i32
    %c0_i32_0 = arith.constant 0 : i32
    %c0_i32_1 = arith.constant 0 : i32
    %c0_i32_2 = arith.constant 0 : i32
    return %c0_i32, %c0_i32_0, %c0_i32_1 : i32, i32, i32
  }
  func.func @transform_4(%arg0: i32) -> (i32, i32) {
    %c0_i32 = arith.constant 0 : i32
    %c0_i32_0 = arith.constant 0 : i32
    return %arg0, %c0_i32 : i32, i32
  }
}

</mosaic_0001>

<bundles_post_ra>
// kernel: tpu_custom_call.1
= control target key start
LH: loop header
LB: loop body
LE: loop exit
PB: predicated region body
PF: predicated region fallthrough
CT: control target
= control target key end

     0   :  { %9 = vsyncpa [#allocation3], 0  ;;  %s1027_s0 = inlined_call_operand.hbm [shape: f32[16,32], index: 0, kind: input, shape index: {}]   ;;  %s1028_s1 = inlined_call_operand.hbm [shape: f32[6,128], index: 1, kind: input, shape index: {}]   ;;  %s1029_s2 = inlined_call_operand.hbm [shape: bf16[32,128], index: 2, kind: input, shape index: {}]   ;;  %s1030_s3 = inlined_call_operand.hbm [shape: bf16[5,128,128], index: 3, kind: input, shape index: {}]   ;;  %s1031_s4 = inlined_call_operand.hbm [shape: bf16[16,128], index: 4, kind: output, shape index: {}]  }
   0x1   :  { %10 = vsyncpa [#allocation6], 0 }
   0x2   :  { %11 = vsyncpa [#allocation9], 0  ;;  %s31_s17 = sshll.u32 %s1028_s1, 4  ;;  %s32_s17 = int_to_ptr.hbm [resolvable:$true] %s31_s17 }
   0x3   :  { %12 = vsyncpa [#allocation4], 0  ;;  %s961_s18 = smov [#allocation5]   ;;  %s17_s22 = sshll.u32 %s1027_s0, 4  ;;  %s18_s22 = int_to_ptr.hbm [resolvable:$true] %s17_s22 }
   0x4   :  { %s33_s19 = sshll.u32 %s961_s18, 4  ;;  %s962_s23 = smov [#allocation2]   ;;  %s34_s19 = int_to_ptr.vmem [resolvable:$true] %s33_s19 }
   0x5   :  { %36 = dma.hbm_to_vmem [thread:$0]  %s32_s17, 128, %s34_s19, [#allocation6]  }
   0x6   :  { %s19_s24 = sshll.u32 %s962_s23, 4  ;;  %s963_s25 = smov 128   ;;  %s20_s24 = int_to_ptr.vmem [resolvable:$true] %s19_s24 }
   0x7   :  { %s964_s26 = smov 8   ;;  %s41_s1 = sshll.u32 %s1029_s2, 4  ;;  %s42_s1 = int_to_ptr.hbm [resolvable:$true] %s41_s1 }
   0x8   :  { %25 = dma.hbm_to_vmem [thread:$0]  %s18_s22, 256, %s20_s24, [#allocation3], %s963_s25, %s963_s25, %s964_s26  }
   0x9   :  { %s965_s29 = smov [#allocation7]   ;;  %s54_s0 = sshll.u32 %s1030_s3, 4  ;;  %s55_s0 = int_to_ptr.hbm [resolvable:$true] %s54_s0 }
   0xa   :  { %s43_s30 = sshll.u32 %s965_s29, 4  ;;  %s966_s7 = smov 64   ;;  %s44_s30 = int_to_ptr.vmem [resolvable:$true] %s43_s30 }
   0xb   :  { %s967_s8 = smov 4   ;;  %s968_s9 = smov [#allocation8]  }
   0xc   :  { %49 = dma.hbm_to_vmem [thread:$0]  %s42_s1, 256, %s44_s30, [#allocation6], %s966_s7, %s966_s7, %s967_s8  }
   0xd   :  { %s56_s10 = sshll.u32 %s968_s9, 4  ;;  %s57_s10 = int_to_ptr.vmem [resolvable:$true] %s56_s10 }
   0xe   :  { %62 = dma.hbm_to_vmem [thread:$0]  %s55_s0, 5120, %s57_s10, [#allocation9], %s966_s7, %s966_s7, %s967_s8  }
   0xf   :  { %953 = dma.done.wait [#allocation3], 256  }
  0x10   :  { %954 = vsyncadd [#allocation3], 4294967040 }
  0x11   :  { %955 = dma.done.wait [#allocation6], 384  }
  0x12   :  { %956 = vsyncadd [#allocation6], 4294966912 }
  0x13   :  { %957 = dma.done.wait [#allocation9], 5120  }
  0x14   :  { %958 = vsyncadd [#allocation9], 4294962176  ;;  %v770_v0 = vld [vmem:[#allocation7 + $0x8] sm:$0xff]  ;;  %v769_v2 = vld [vmem:[#allocation7] sm:$0xff]  ;;  %vm101_vm0 = vcmask 261120   ;;  %s969_s2 = smov [#allocation10]  }
  0x15   :  { %v778_v1 = vld [vmem:[#allocation8 + $0x38] sm:$0xff]  ;;  %111 = vmatpush.bf16.msra.mxu0 %v770_v0  ;;  %v82_v4 = vld [vmem:[#allocation2 + $0x8] sm:$0xff]  ;;  %v777_v5 = vld [vmem:[#allocation8 + $0x30] sm:$0xff]  ;;  %s583_s3 = sshll.u32 %s969_s2, 4  ;;  %s585_s13 = sshll.u32 %s1031_s4, 4  ;;  %s584_s3 = int_to_ptr.vmem [resolvable:$true] %s583_s3  ;;  %s586_s13 = int_to_ptr.hbm [resolvable:$true] %s585_s13 }
  0x16   :  { %v81_v3 = vld [vmem:[#allocation2] sm:$0xff]  ;;  %187 = vmatpush.bf16.msra.mxu1 %v778_v1  ;;  %v776_v7 = vld [vmem:[#allocation8 + $0x28] sm:$0xff]  ;;  %v775_v8 = vld [vmem:[#allocation8 + $0x20] sm:$0xff] }
  0x17   :  { %v87_v6 = vpack.c.bf16 %v82_v4, %v81_v3  ;;  %v774_v9 = vld [vmem:[#allocation8 + $0x18] sm:$0xff]  ;;  %v773_v10 = vld [vmem:[#allocation8 + $0x10] sm:$0xff]  ;;  %v772_v11 = vld [vmem:[#allocation8 + $0x8] sm:$0xff] }
  0x18   :  { %v771_v12 = vld [vmem:[#allocation8] sm:$0xff]  ;;  %v786_v13 = vld [vmem:[#allocation8 + $0x78] sm:$0xff]  ;;  %v785_v14 = vld [vmem:[#allocation8 + $0x70] sm:$0xff] }
  0x19   :  { %112 = vmatpush.bf16.msra.mxu0 %v769_v2  ;;  %268 = vmatpush.bf16.msra.mxu2 %v786_v13  ;;  %v784_v15 = vld [vmem:[#allocation8 + $0x68] sm:$0xff]  ;;  %v783_v16 = vld [vmem:[#allocation8 + $0x60] sm:$0xff]  ;;  %v782_v17 = vld [vmem:[#allocation8 + $0x58] sm:$0xff] }
  0x1a   :  { %188 = vmatpush.bf16.msra.mxu1 %v777_v5  ;;  %v1013_v18 = vld [vmem:[#allocation5] sm:$0x3f]  ;;  %v781_v27 = vld [vmem:[#allocation8 + $0x50] sm:$0xff]  ;;  %v779_v29 = vld [vmem:[#allocation8 + $0x40] sm:$0xff] }
  0x1b   :  { %v88_v20 = vperm.slane %v1013_v18, 0  ;;  %v780_v28 = vld [vmem:[#allocation8 + $0x48] sm:$0xff]  ;;  %v794_v30 = vld [vmem:[#allocation8 + $0xb8] sm:$0xff]  ;;  %v793_v31 = vld [vmem:[#allocation8 + $0xb0] sm:$0xff]  ;;  %v138_v35 = vperm.slane %v1013_v18, 1  ;;  %v219_v49 = vperm.slane %v1013_v18, 2 }
  0x1c   :  { %608 = vmatmul.msk.bf16.vlgmr.msra.gmra.mxu0 %vm101_vm0, %v87_v6  ;;  %351 = vmatpush.bf16.msra.mxu3 %v794_v30  ;;  %v792_v32 = vld [vmem:[#allocation8 + $0xa8] sm:$0xff]  ;;  %v791_v33 = vld [vmem:[#allocation8 + $0xa0] sm:$0xff]  ;;  %v790_v40 = vld [vmem:[#allocation8 + $0x98] sm:$0xff]  ;;  %v302_v1 = vperm.slane %v1013_v18, 3  ;;  %v385_v13 = vperm.slane %v1013_v18, 4 }
  0x1d   :  { %269 = vmatpush.bf16.msra.mxu2 %v785_v14  ;;  %v789_v41 = vld [vmem:[#allocation8 + $0x90] sm:$0xff]  ;;  %v788_v42 = vld [vmem:[#allocation8 + $0x88] sm:$0xff]  ;;  %v787_v43 = vld [vmem:[#allocation8 + $0x80] sm:$0xff] }
  0x1e   :  { %189 = vmatpush.bf16.msra.mxu1 %v776_v7  ;;  %v802_v44 = vld [vmem:[#allocation8 + $0xf8] sm:$0xff]  ;;  %v801_v45 = vld [vmem:[#allocation8 + $0xf0] sm:$0xff]  ;;  %v800_v46 = vld [vmem:[#allocation8 + $0xe8] sm:$0xff] }
  0x1f   :  { %434 = vmatpush.bf16.msrb.mxu0 %v802_v44  ;;  %v799_v47 = vld [vmem:[#allocation8 + $0xe0] sm:$0xff]  ;;  %v798_v56 = vld [vmem:[#allocation8 + $0xd8] sm:$0xff]  ;;  %v797_v57 = vld [vmem:[#allocation8 + $0xd0] sm:$0xff] }
  0x20   :  { %352 = vmatpush.bf16.msra.mxu3 %v793_v31  ;;  %v796_v58 = vld [vmem:[#allocation8 + $0xc8] sm:$0xff]  ;;  %v795_v59 = vld [vmem:[#allocation8 + $0xc0] sm:$0xff]  ;;  %v810_v60 = vld [vmem:[#allocation8 + $0x138] sm:$0xff] }
  0x21   :  { %270 = vmatpush.bf16.msra.mxu2 %v784_v15  ;;  %v809_v61 = vld [vmem:[#allocation8 + $0x130] sm:$0xff]  ;;  %v808_v62 = vld [vmem:[#allocation8 + $0x128] sm:$0xff]  ;;  %v807_v63 = vld [vmem:[#allocation8 + $0x120] sm:$0xff] }
  0x22   :  { %190 = vmatpush.bf16.msra.mxu1 %v775_v8  ;;  %v806_v8 = vld [vmem:[#allocation8 + $0x118] sm:$0xff] }
  0x23   :  { %435 = vmatpush.bf16.msrb.mxu0 %v801_v45 }
  0x24   :  { %353 = vmatpush.bf16.msra.mxu3 %v792_v32 }
  0x25   :  { %271 = vmatpush.bf16.msra.mxu2 %v783_v16 }
  0x26   :  { %191 = vmatpush.bf16.msra.mxu1 %v774_v9  ;;  %v805_v9 = vld [vmem:[#allocation8 + $0x110] sm:$0xff] }
  0x27   :  { %436 = vmatpush.bf16.msrb.mxu0 %v800_v46 }
  0x28   :  { %354 = vmatpush.bf16.msra.mxu3 %v791_v33 }
  0x29   :  { %272 = vmatpush.bf16.msra.mxu2 %v782_v17 }
  0x2a   :  { %192 = vmatpush.bf16.msra.mxu1 %v773_v10  ;;  %v804_v10 = vld [vmem:[#allocation8 + $0x108] sm:$0xff] }
  0x2b   :  { %437 = vmatpush.bf16.msrb.mxu0 %v799_v47 }
  0x2c   :  { %355 = vmatpush.bf16.msra.mxu3 %v790_v40 }
  0x2d   :  { %273 = vmatpush.bf16.msra.mxu2 %v781_v27 }
  0x2e   :  { %193 = vmatpush.bf16.msra.mxu1 %v772_v11  ;;  %v803_v11 = vld [vmem:[#allocation8 + $0x100] sm:$0xff] }
  0x2f   :  { %438 = vmatpush.bf16.msrb.mxu0 %v798_v56 }
  0x30   :  { %356 = vmatpush.bf16.msra.mxu3 %v789_v41 }
  0x31   :  { %274 = vmatpush.bf16.msra.mxu2 %v780_v28 }
  0x32   :  { %194 = vmatpush.bf16.msra.mxu1 %v771_v12 }
  0x33   :  { %439 = vmatpush.bf16.msrb.mxu0 %v797_v57 }
  0x34   :  { %357 = vmatpush.bf16.msra.mxu3 %v788_v42 }
  0x35   :  { %275 = vmatpush.bf16.msra.mxu2 %v779_v29 }
  0x36   :  { %517 = vmatpush.bf16.msrb.mxu1 %v810_v60 }
  0x37   :  { %440 = vmatpush.bf16.msrb.mxu0 %v796_v58 }
  0x38   :  { %358 = vmatpush.bf16.msra.mxu3 %v787_v43 }
  0x3a   :  { %518 = vmatpush.bf16.msrb.mxu1 %v809_v61 }
  0x3b   :  { %441 = vmatpush.bf16.msrb.mxu0 %v795_v59 }
  0x3e   :  { %519 = vmatpush.bf16.msrb.mxu1 %v808_v62 }
  0x42   :  { %520 = vmatpush.bf16.msrb.mxu1 %v807_v63 }
  0x46   :  { %521 = vmatpush.bf16.msrb.mxu1 %v806_v8 }
  0x4a   :  { %522 = vmatpush.bf16.msrb.mxu1 %v805_v9 }
  0x4e   :  { %523 = vmatpush.bf16.msrb.mxu1 %v804_v10 }
  0x52   :  { %524 = vmatpush.bf16.msrb.mxu1 %v803_v11 }
  0x99   :  { %v114_v19 = vpop.f32.mrf.mxu0 }
  0x9a   :  { %v115_v21 = vadd.f32 %v114_v19, %v88_v20 }
  0x9c   :  { %v119_v24 = vmax.f32 %v115_v21, 0.0  ;;  %v468_v21 = vperm.slane %v1013_v18, 5 }
  0xa1   :  { %v116_v22 = vpop.f32.mrf.mxu0 }
  0xa2   :  { %v117_v23 = vadd.f32 %v116_v22, %v88_v20 }
  0xa4   :  { %v120_v25 = vmax.f32 %v117_v23, 0.0 }
  0xa6   :  { %v137_v26 = vpack.c.bf16 %v120_v25, %v119_v24 }
  0xa8   :  { %195 = vmatmul.bf16.vlgmr.msra.gmra.mxu1 %v137_v26 }
 0x125   :  { %v196_v34 = vpop.f32.mrf.mxu1 }
 0x126   :  { %v197_v37 = vadd.f32 %v196_v34, %v138_v35 }
 0x12d   :  { %v198_v36 = vpop.f32.mrf.mxu1 }
 0x12e   :  { %v199_v38 = vadd.f32 %v198_v36, %v138_v35 }
 0x130   :  { %v218_v39 = vpack.c.bf16 %v199_v38, %v197_v37 }
 0x132   :  { %276 = vmatmul.bf16.vlgmr.msra.gmra.mxu2 %v218_v39 }
 0x1b5   :  { %v277_v48 = vpop.f32.mrf.mxu2 }
 0x1b6   :  { %v278_v50 = vadd.f32 %v277_v48, %v219_v49 }
 0x1b8   :  { %v282_v53 = vmax.f32 %v278_v50, 0.0 }
 0x1bd   :  { %v279_v51 = vpop.f32.mrf.mxu2 }
 0x1be   :  { %v280_v52 = vadd.f32 %v279_v51, %v219_v49 }
 0x1c0   :  { %v283_v54 = vmax.f32 %v280_v52, 0.0 }
 0x1c2   :  { %v301_v55 = vpack.c.bf16 %v283_v54, %v282_v53 }
 0x1c4   :  { %359 = vmatmul.bf16.vlgmr.msra.gmra.mxu3 %v301_v55 }
 0x247   :  { %v360_v0 = vpop.f32.mrf.mxu3 }
 0x248   :  { %v361_v2 = vadd.f32 %v360_v0, %v302_v1 }
 0x24a   :  { %v365_v5 = vmax.f32 %v361_v2, 0.0 }
 0x24f   :  { %v362_v3 = vpop.f32.mrf.mxu3 }
 0x250   :  { %v363_v4 = vadd.f32 %v362_v3, %v302_v1 }
 0x252   :  { %v366_v6 = vmax.f32 %v363_v4, 0.0 }
 0x254   :  { %v384_v7 = vpack.c.bf16 %v366_v6, %v365_v5 }
 0x256   :  { %442 = vmatmul.bf16.vlgmr.msrb.gmra.mxu0 %v384_v7 }
 0x2d3   :  { %v443_v12 = vpop.f32.mrf.mxu0 }
 0x2d4   :  { %v444_v14 = vadd.f32 %v443_v12, %v385_v13 }
 0x2d6   :  { %v448_v17 = vmax.f32 %v444_v14, 0.0 }
 0x2db   :  { %v445_v15 = vpop.f32.mrf.mxu0 }
 0x2dc   :  { %v446_v16 = vadd.f32 %v445_v15, %v385_v13 }
 0x2de   :  { %v449_v19 = vmax.f32 %v446_v16, 0.0 }
 0x2e0   :  { %v467_v20 = vpack.c.bf16 %v449_v19, %v448_v17 }
 0x2e2   :  { %525 = vmatmul.bf16.vlgmr.msrb.gmra.mxu1 %v467_v20 }
 0x35f   :  { %v526_v22 = vpop.f32.mrf.mxu1 }
 0x360   :  { %v527_v23 = vadd.f32 %v526_v22, %v468_v21 }
 0x362   :  { %531 = vmax.xlane.f32.xlu0 %v527_v23 }
 0x367   :  { %v528_v24 = vpop.f32.mrf.mxu1 }
 0x368   :  { %v529_v25 = vadd.f32 %v528_v24, %v468_v21 }
 0x36a   :  { %533 = vmax.xlane.f32.xlu0 %v529_v25 }
 0x3d5   :  { %v532_v26 = vpop.xlane.xlu0 %531 }
 0x3d6   :  { %v535_v27 = vsub.f32 %v527_v23, %v532_v26 }
 0x3d8   :  { %v537_v28 = vmul.f32 1.442695, %v535_v27 }
 0x3da   :  { %825 = vpow2.f32 %v537_v28 }
 0x3dd   :  { %v534_v29 = vpop.xlane.xlu0 %533 }
 0x3de   :  { %v536_v30 = vsub.f32 %v529_v25, %v534_v29 }
 0x3e0   :  { %v826_v31 = vpop.eup %825  ;;  %v539_v32 = vmul.f32 1.442695, %v536_v30 }
 0x3e1   :  { %541 = vadd.xlane.f32.xlu1 %v826_v31 }
 0x3e2   :  { %827 = vpow2.f32 %v539_v32 }
 0x3e8   :  { %v828_v33 = vpop.eup %827 }
 0x3e9   :  { %543 = vadd.xlane.f32.xlu1 %v828_v33 }
 0x454   :  { %v542_v34 = vpop.xlane.xlu1 %541 }
 0x455   :  { %829 = vrcp.f32 %v542_v34  ;;  %v556_v42 = vand.u32 2147483648, %v542_v34  ;;  %vm550_vm2 = vweird.f32 %v542_v34  ;;  %v554_v43 = vand.u32 2147483647, %v542_v34 }
 0x457   :  { %v557_v49 = vor.u32 1.1754944e-38, %v556_v42  ;;  %vm555_vm5 = vcmp.eq.f32.partialorder %v554_v43, 8.507059e+37 }
 0x45b   :  { %v830_v18 = vpop.eup %829 }
 0x45c   :  { %v546_v35 = vmul.f32 %v830_v18, %v542_v34  ;;  %v544_v36 = vpop.xlane.xlu1 %543  ;;  %vm551_vm1 = vweird.f32 %v830_v18 }
 0x45d   :  { %831 = vrcp.f32 %v544_v36  ;;  %vm552_vm3 = vmor %vm550_vm2, %vm551_vm1  ;;  %v571_v45 = vand.u32 2147483648, %v544_v36  ;;  %v569_v47 = vand.u32 2147483647, %v544_v36  ;;  %vm565_vm6 = vweird.f32 %v544_v36 }
 0x45e   :  { %v547_v37 = vsub.f32 1.0, %v546_v35 }
 0x45f   :  { %v572_v51 = vor.u32 1.1754944e-38, %v571_v45  ;;  %vm570_vm8 = vcmp.eq.f32.partialorder %v569_v47, 8.507059e+37 }
 0x460   :  { %v548_v38 = vmul.f32 %v830_v18, %v547_v37 }
 0x462   :  { %v549_v40 = vadd.f32 %v830_v18, %v548_v38 }
 0x463   :  { %v832_v39 = vpop.eup %831 }
 0x464   :  { %v561_v41 = vmul.f32 %v832_v39, %v544_v36  ;;  %vm566_vm4 = vweird.f32 %v832_v39  ;;  %v553_v48 = vsel %vm552_vm3, %v830_v18, %v549_v40 }
 0x465   :  { %vm567_vm7 = vmor %vm565_vm6, %vm566_vm4  ;;  %v558_v52 = vsel %vm555_vm5, %v557_v49, %v553_v48 }
 0x466   :  { %v562_v44 = vsub.f32 1.0, %v561_v41  ;;  %v559_v55 = vmul.f32 %v826_v31, %v558_v52 }
 0x468   :  { %v563_v46 = vmul.f32 %v832_v39, %v562_v44 }
 0x46a   :  { %v564_v50 = vadd.f32 %v832_v39, %v563_v46 }
 0x46c   :  { %v568_v53 = vsel %vm567_vm7, %v832_v39, %v564_v50 }
 0x46d   :  { %v573_v54 = vsel %vm570_vm8, %v572_v51, %v568_v53 }
 0x46e   :  { %v574_v56 = vmul.f32 %v828_v33, %v573_v54 }
 0x470   :  { %v814_v57 = vpack.c.bf16 %v574_v56, %v559_v55 }
 0x472   :  { %815 = vst [vmem:[#allocation10] sm:$0xff] %v814_v57  }
 0x473   :  { %591 = dma.vmem_to_hbm [thread:$0]  %s584_s3, 128, %s586_s13, [#allocation4], %s966_s7, %s966_s7, %s967_s8  }
 0x474   :  { %959 = dma.done.wait [#allocation4], 128  }
 0x475   :  { %960 = vsyncadd [#allocation4], 4294967168 }
 0x476   :  { %596 = vsyncpa [#allocation3], 1 }
 0x477   :  { %597 = vsyncpa [#allocation6], 1 }
 0x478   :  { %598 = vsyncpa [#allocation9], 1 }
 0x479   :  { %599 = vsyncpa [#allocation4], 1 }

</bundles_post_ra>
